<compile_context>
chip_gen: v6e
topology: v6e:2x2x1
jax: 0.10.0
libtpu: 0.0.40
codegen_flags: <defaults>
</compile_context>

<pallas_src>
import functools

import jax
import jax.numpy as jnp
from jax.experimental import pallas as pl
from jax.experimental.pallas import tpu as pltpu


def _final_conv_kernel(x_ref, w_ref, o_ref, *, H, W, fuse_taps):
    """Processes `block_n` images per grid step.

    x_ref: (block_n, Cin, H*W)    flattened NCHW input (no padding)
    w_ref: (Cout, 9*Cin)          if fuse_taps (tap-major along K)
           (9, Cout, Cin)         otherwise (one (Cout, Cin) tile per tap)
    o_ref: (block_n, Cout, H*W)   flattened NCHW output
    """
    L = H * W
    block_n, Cin = x_ref.shape[0], x_ref.shape[1]
    Cout = o_ref.shape[1]

    # ---- boundary masks: built ONCE per grid step, reused for all images --
    # Input-side masking (shape (Cin, L)) for the fused-K path, output-side
    # masking (shape (Cout, L)) when Cout < Cin.
    cm = Cin if fuse_taps else Cout
    p = jax.lax.broadcasted_iota(jnp.int32, (cm, L), 1)   # flat pos = row*W+col
    not_top = p >= W                     # row >= 1     (needed for dy = -1)
    not_bot = p < (H - 1) * W            # row <= H-2   (needed for dy = +1)
    if W & (W - 1) == 0:                 # power-of-two W: mod -> bitwise AND
        col = jnp.bitwise_and(p, W - 1)
    else:
        col = jax.lax.rem(p, W)          # one hoisted remainder otherwise
    not_left = col >= 1                  # needed for dx = -1
    not_right = col <= W - 2             # needed for dx = +1

    tap_order = [(dy, dx) for dy in (-1, 0, 1) for dx in (-1, 0, 1)]
    tap_masks = []
    for dy, dx in tap_order:
        m = None
        if dy == -1:
            m = not_top
        elif dy == 1:
            m = not_bot
        if dx == -1:
            m = not_left if m is None else jnp.logical_and(m, not_left)
        elif dx == 1:
            m = not_right if m is None else jnp.logical_and(m, not_right)
        tap_masks.append(m)              # None for the centre tap

    for b in range(block_n):
        x2d = x_ref[b]                                   # (Cin, L)

        def shifted(dy, dx):
            s = dy * W + dx
            if s == 0:
                return x2d
            # rolled[:, p] == x2d[:, (p + s) % L]  (XLU lane rotation)
            return pltpu.roll(x2d, shift=(-s) % L, axis=1)

        if fuse_taps:
            # Stack the 9 masked taps along the channel axis -> ONE dot with
            # K = 9*Cin (much better MXU K-fill, single accumulator write).
            parts = []
            for (dy, dx), m in zip(tap_order, tap_masks):
                patch = shifted(dy, dx)
                if m is not None:
                    patch = jnp.where(m, patch, jnp.zeros_like(patch))
                parts.append(patch)
            patches = jnp.concatenate(parts, axis=0)     # (9*Cin, L)
            acc = jnp.dot(w_ref[...], patches,
                          preferred_element_type=jnp.float32)
        else:
            # Cout < Cin: mask the cheap (Cout, L) side after each tap dot.
            acc = jnp.zeros((Cout, L), dtype=jnp.float32)
            for t, ((dy, dx), m) in enumerate(zip(tap_order, tap_masks)):
                y = jnp.dot(w_ref[t], shifted(dy, dx),
                            preferred_element_type=jnp.float32)
                if m is not None:
                    y = jnp.where(m, y, 0.0)
                acc = acc + y

        o_ref[b] = acc.astype(o_ref.dtype)


def _pick_block_n(N, Cin, Cout, L, itemsize):
    """Largest divisor of N that (a) leaves >= 2 grid steps when N >= 2 so
    megacore / v7x's two TensorCores both get work, and (b) keeps the per-step
    activation working set (input + 9-tap patches + f32 acc + output) inside a
    modest VMEM budget."""
    per_img = (10 * Cin + 2 * Cout) * L * itemsize
    budget = 12 * 1024 * 1024
    max_nb = max(1, budget // max(per_img, 1))
    best = 1
    for cand in range(1, N + 1):
        if cand > max_nb:
            break
        if N % cand:
            continue
        if N // cand >= 2 or N == 1:
            best = cand
    return best


def final_conv(x_nchw, weight_oihw, *, block_n=None):
    """Equivalent of FinalConv.forward: Conv2d(k=3, s=1, p=1, bias=False).

    x_nchw: (N, Cin, H, W); weight_oihw: (Cout, Cin, 3, 3). Any float dtype;
    bf16 inputs halve HBM traffic while keeping the f32 MXU accumulator.
    """
    N, Cin, H, W = x_nchw.shape
    Cout = weight_oihw.shape[0]
    L = H * W
    itemsize = x_nchw.dtype.itemsize

    fuse_taps = Cout >= Cin

    # Free reshape (trailing-dim merge of contiguous NCHW); no transpose/pad
    # pass over the activations ever hits HBM.
    x_flat = x_nchw.reshape(N, Cin, L)

    # Tiny weight reshuffle (Cout*Cin*9 elements), negligible wrapper work.
    if fuse_taps:
        # OIHW -> (Cout, kh, kw, Cin) -> (Cout, 9*Cin), tap-major along K to
        # match the in-kernel patch stacking order.
        w_k = jnp.transpose(weight_oihw, (0, 2, 3, 1)).reshape(Cout, 9 * Cin)
        w_block = (Cout, 9 * Cin)
        w_index_map = lambda n: (0, 0)
    else:
        # OIHW -> (kh*kw, Cout, Cin): one (Cout, Cin) tile per tap.
        w_k = jnp.transpose(weight_oihw, (2, 3, 0, 1)).reshape(9, Cout, Cin)
        w_block = (9, Cout, Cin)
        w_index_map = lambda n: (0, 0, 0)

    if block_n is None:
        block_n = _pick_block_n(N, Cin, Cout, L, itemsize)
    assert N % block_n == 0, "block_n must divide the batch"
    grid_n = N // block_n

    kernel = functools.partial(_final_conv_kernel, H=H, W=W,
                               fuse_taps=fuse_taps)

    cost = pl.CostEstimate(
        flops=2 * N * Cout * Cin * 9 * H * W,
        transcendentals=0,
        bytes_accessed=(x_nchw.size + weight_oihw.size + N * Cout * L)
        * itemsize,
    )

    block_bytes = block_n * (Cin + Cout) * L * itemsize
    w_bytes = w_k.size * w_k.dtype.itemsize
    # Double-buffered activation blocks + weight + headroom.  Cap at 64 MiB so
    # we never ask for more than v7x's physical VMEM (v5e/v6e could go higher
    # once the spatially tiled variant lands).
    vmem_limit = int(max(32 << 20,
                         min(64 << 20, 4 * block_bytes + 2 * w_bytes + (8 << 20))))

    def build(single_buffer_weight):
        if single_buffer_weight:
            w_spec = pl.BlockSpec(w_block, w_index_map,
                                  pipeline_mode=pl.Buffered(1))
        else:
            w_spec = pl.BlockSpec(w_block, w_index_map)
        return pl.pallas_call(
            kernel,
            out_shape=jax.ShapeDtypeStruct((N, Cout, L), x_nchw.dtype),
            grid_spec=pltpu.PrefetchScalarGridSpec(
                num_scalar_prefetch=0,
                grid=(grid_n,),
                in_specs=[
                    pl.BlockSpec((block_n, Cin, L), lambda n: (n, 0, 0)),
                    w_spec,
                ],
                out_specs=pl.BlockSpec((block_n, Cout, L), lambda n: (n, 0, 0)),
            ),
            compiler_params=pltpu.CompilerParams(
                dimension_semantics=("parallel",),
                vmem_limit_bytes=vmem_limit,
            ),
            cost_estimate=cost,
        )

    try:
        # Weight block never changes across grid steps: single-buffer it.
        out_flat = build(True)(x_flat, w_k)
    except Exception:
        # Fallback if this JAX/Mosaic build rejects pipeline_mode/Buffered(1).
        out_flat = build(False)(x_flat, w_k)

    return out_flat.reshape(N, Cout, H, W)


if __name__ == "__main__":
    key = jax.random.PRNGKey(0)
    k_x, k_w, k_w2 = jax.random.split(key, 3)

    # Small shapes consistent with the module: batch=2, in_channels=4,
    # out_channels=8, spatial 16x16.
    N, Cin, Cout, H, W = 2, 4, 8, 16, 16

    x = jax.random.normal(k_x, (N, Cin, H, W), dtype=jnp.float32)
    fan_in = Cin * 3 * 3
    bound = 1.0 / float(fan_in) ** 0.5
    weight = jax.random.uniform(k_w, (Cout, Cin, 3, 3),
                                minval=-bound, maxval=bound,
                                dtype=jnp.float32)

    def conv_ref(xa, wa):
        return jax.lax.conv_general_dilated(
            xa, wa, window_strides=(1, 1), padding=((1, 1), (1, 1)),
            dimension_numbers=("NCHW", "OIHW", "NCHW"),
            preferred_element_type=jnp.float32)

    # --- f32, Cout >= Cin: fused K=9*Cin single-dot path --------------------
    out = jax.block_until_ready(final_conv(x, weight))
    ref = conv_ref(x, weight)
    assert out.shape == (N, Cout, H, W)
    assert jnp.allclose(out, ref, atol=1e-5, rtol=1e-5)

    # --- f32, Cout < Cin: per-tap dots with output-side masking -------------
    Cout2 = 2
    weight2 = jax.random.uniform(k_w2, (Cout2, Cin, 3, 3),
                                 minval=-bound, maxval=bound,
                                 dtype=jnp.float32)
    out2 = jax.block_until_ready(final_conv(x, weight2))
    ref2 = conv_ref(x, weight2)
    assert out2.shape == (N, Cout2, H, W)
    assert jnp.allclose(out2, ref2, atol=1e-5, rtol=1e-5)

    # --- bf16 I/O (halved HBM traffic; f32 MXU accumulation kept) ------------
    out_bf = jax.block_until_ready(
        final_conv(x.astype(jnp.bfloat16), weight.astype(jnp.bfloat16)))
    ref_bf = conv_ref(x.astype(jnp.bfloat16).astype(jnp.float32),
                      weight.astype(jnp.bfloat16).astype(jnp.float32))
    assert out_bf.dtype == jnp.bfloat16
    assert jnp.allclose(out_bf.astype(jnp.float32), ref_bf,
                        atol=5e-2, rtol=5e-2)

    print("KERNEL_OK")
</pallas_src>

<mosaic_0001>
module attributes {stable_mosaic.version = 11 : i64} {
  func.func @_final_conv_kernel(%arg0: i32, %arg1: memref<1x4x256xf32, #tpu.memory_space<vmem>>, %arg2: memref<8x36xf32, #tpu.memory_space<vmem>>, %arg3: memref<1x8x256xf32, #tpu.memory_space<vmem>>) attributes {dimension_semantics = [#tpu.dimension_semantics<parallel>], iteration_bounds = array<i64: 2>, scalar_prefetch = 0 : i64, scratch_operands = 0 : i64, tpu.core_type = #tpu.core_type<tc>, window_params = [{transform_indices = @transform_0, window_bounds = array<i64: 1, 4, 256>}, {pipeline_mode = #tpu.pipeline_mode<synchronous>, transform_indices = @transform_1, window_bounds = array<i64: 8, 36>}, {transform_indices = @transform_2, window_bounds = array<i64: 1, 8, 256>}]} {
    %0 = tpu.iota {dimensions = array<i32: 1>} : vector<4x256xi32>
    %c16_i32 = arith.constant 16 : i32
    %1 = vector.broadcast %c16_i32 : i32 to vector<4x256xi32>
    %2 = arith.cmpi sge, %0, %1 : vector<4x256xi32>
    %c240_i32 = arith.constant 240 : i32
    %3 = vector.broadcast %c240_i32 : i32 to vector<4x256xi32>
    %4 = arith.cmpi slt, %0, %3 : vector<4x256xi32>
    %c15_i32 = arith.constant 15 : i32
    %5 = vector.broadcast %c15_i32 : i32 to vector<4x256xi32>
    %6 = arith.andi %0, %5 : vector<4x256xi32>
    %c1_i32 = arith.constant 1 : i32
    %7 = vector.broadcast %c1_i32 : i32 to vector<4x256xi32>
    %8 = arith.cmpi sge, %6, %7 : vector<4x256xi32>
    %c14_i32 = arith.constant 14 : i32
    %9 = vector.broadcast %c14_i32 : i32 to vector<4x256xi32>
    %10 = arith.cmpi sle, %6, %9 : vector<4x256xi32>
    %11 = arith.andi %2, %8 : vector<4x256xi1>
    %12 = arith.andi %2, %10 : vector<4x256xi1>
    %13 = arith.andi %4, %8 : vector<4x256xi1>
    %14 = arith.andi %4, %10 : vector<4x256xi1>
    %c0 = arith.constant 0 : index
    %c0_0 = arith.constant 0 : index
    %c0_1 = arith.constant 0 : index
    %15 = vector.load %arg1[%c0, %c0_0, %c0_1] : memref<1x4x256xf32, #tpu.memory_space<vmem>>, vector<1x4x256xf32>
    %16 = vector.shape_cast %15 : vector<1x4x256xf32> to vector<4x256xf32>
    %c17_i32 = arith.constant 17 : i32
    %17 = tpu.dynamic_rotate %16 by %c17_i32 dim 1 : vector<4x256xf32>, i32 -> vector<4x256xf32>
    %cst = arith.constant 0.000000e+00 : f32
    %18 = vector.broadcast %cst : f32 to vector<4x256xf32>
    %19 = arith.select %11, %17, %18 : vector<4x256xi1>, vector<4x256xf32>
    %c16_i32_2 = arith.constant 16 : i32
    %20 = tpu.dynamic_rotate %16 by %c16_i32_2 dim 1 : vector<4x256xf32>, i32 -> vector<4x256xf32>
    %cst_3 = arith.constant 0.000000e+00 : f32
    %21 = vector.broadcast %cst_3 : f32 to vector<4x256xf32>
    %22 = arith.select %2, %20, %21 : vector<4x256xi1>, vector<4x256xf32>
    %c15_i32_4 = arith.constant 15 : i32
    %23 = tpu.dynamic_rotate %16 by %c15_i32_4 dim 1 : vector<4x256xf32>, i32 -> vector<4x256xf32>
    %cst_5 = arith.constant 0.000000e+00 : f32
    %24 = vector.broadcast %cst_5 : f32 to vector<4x256xf32>
    %25 = arith.select %12, %23, %24 : vector<4x256xi1>, vector<4x256xf32>
    %c1_i32_6 = arith.constant 1 : i32
    %26 = tpu.dynamic_rotate %16 by %c1_i32_6 dim 1 : vector<4x256xf32>, i32 -> vector<4x256xf32>
    %cst_7 = arith.constant 0.000000e+00 : f32
    %27 = vector.broadcast %cst_7 : f32 to vector<4x256xf32>
    %28 = arith.select %8, %26, %27 : vector<4x256xi1>, vector<4x256xf32>
    %c255_i32 = arith.constant 255 : i32
    %29 = tpu.dynamic_rotate %16 by %c255_i32 dim 1 : vector<4x256xf32>, i32 -> vector<4x256xf32>
    %cst_8 = arith.constant 0.000000e+00 : f32
    %30 = vector.broadcast %cst_8 : f32 to vector<4x256xf32>
    %31 = arith.select %10, %29, %30 : vector<4x256xi1>, vector<4x256xf32>
    %c241_i32 = arith.constant 241 : i32
    %32 = tpu.dynamic_rotate %16 by %c241_i32 dim 1 : vector<4x256xf32>, i32 -> vector<4x256xf32>
    %cst_9 = arith.constant 0.000000e+00 : f32
    %33 = vector.broadcast %cst_9 : f32 to vector<4x256xf32>
    %34 = arith.select %13, %32, %33 : vector<4x256xi1>, vector<4x256xf32>
    %c240_i32_10 = arith.constant 240 : i32
    %35 = tpu.dynamic_rotate %16 by %c240_i32_10 dim 1 : vector<4x256xf32>, i32 -> vector<4x256xf32>
    %cst_11 = arith.constant 0.000000e+00 : f32
    %36 = vector.broadcast %cst_11 : f32 to vector<4x256xf32>
    %37 = arith.select %4, %35, %36 : vector<4x256xi1>, vector<4x256xf32>
    %c239_i32 = arith.constant 239 : i32
    %38 = tpu.dynamic_rotate %16 by %c239_i32 dim 1 : vector<4x256xf32>, i32 -> vector<4x256xf32>
    %cst_12 = arith.constant 0.000000e+00 : f32
    %39 = vector.broadcast %cst_12 : f32 to vector<4x256xf32>
    %40 = arith.select %14, %38, %39 : vector<4x256xi1>, vector<4x256xf32>
    %41 = tpu.concatenate %19, %22, %25, %28, %16, %31, %34, %37, %40 in 0 : vector<4x256xf32>, vector<4x256xf32>, vector<4x256xf32>, vector<4x256xf32>, vector<4x256xf32>, vector<4x256xf32>, vector<4x256xf32>, vector<4x256xf32>, vector<4x256xf32> -> vector<36x256xf32>
    %c0_13 = arith.constant 0 : index
    %c0_14 = arith.constant 0 : index
    %42 = vector.load %arg2[%c0_13, %c0_14] : memref<8x36xf32, #tpu.memory_space<vmem>>, vector<8x36xf32>
    %cst_15 = arith.constant dense<0.000000e+00> : vector<8x256xf32>
    %43 = tpu.matmul %42, %41, %cst_15 {dimension_numbers = #tpu.dot_dimension_numbers<[1], [0], [0], [1], [0, 0, 1, 1], [], []>} : vector<8x36xf32>, vector<36x256xf32>, vector<8x256xf32> -> vector<8x256xf32>
    %c0_16 = arith.constant 0 : index
    %c0_17 = arith.constant 0 : index
    %c0_18 = arith.constant 0 : index
    %44 = vector.load %arg3[%c0_16, %c0_17, %c0_18] : memref<1x8x256xf32, #tpu.memory_space<vmem>>, vector<1x8x256xf32>
    %45 = vector.shape_cast %44 : vector<1x8x256xf32> to vector<8x256xf32>
    %46 = vector.shape_cast %43 : vector<8x256xf32> to vector<1x8x256xf32>
    tpu.vector_store %arg3[%c0_16, %c0_17, %c0_18], %46 {strides = array<i32>} : memref<1x8x256xf32, #tpu.memory_space<vmem>>, vector<1x8x256xf32>,
    return
  }
  func.func @transform_0(%arg0: i32) -> (i32, i32, i32) {
    %c0_i32 = arith.constant 0 : i32
    %c0_i32_0 = arith.constant 0 : i32
    %c0_i32_1 = arith.constant 0 : i32
    return %arg0, %c0_i32, %c0_i32_0 : i32, i32, i32
  }
  func.func @transform_1(%arg0: i32) -> (i32, i32) {
    %c0_i32 = arith.constant 0 : i32
    %c0_i32_0 = arith.constant 0 : i32
    %c0_i32_1 = arith.constant 0 : i32
    return %c0_i32, %c0_i32_0 : i32, i32
  }
  func.func @transform_2(%arg0: i32) -> (i32, i32, i32) {
    %c0_i32 = arith.constant 0 : i32
    %c0_i32_0 = arith.constant 0 : i32
    %c0_i32_1 = arith.constant 0 : i32
    return %arg0, %c0_i32, %c0_i32_0 : i32, i32, i32
  }
}

module attributes {stable_mosaic.version = 11 : i64} {
  func.func @_final_conv_kernel(%arg0: i32, %arg1: memref<1x4x256xf32, #tpu.memory_space<vmem>>, %arg2: memref<8x36xf32, #tpu.memory_space<vmem>>, %arg3: memref<1x8x256xf32, #tpu.memory_space<vmem>>) attributes {dimension_semantics = [#tpu.dimension_semantics<parallel>], iteration_bounds = array<i64: 2>, scalar_prefetch = 0 : i64, scratch_operands = 0 : i64, tpu.core_type = #tpu.core_type<tc>, window_params = [{transform_indices = @transform_0, window_bounds = array<i64: 1, 4, 256>}, {pipeline_mode = #tpu.pipeline_mode<synchronous>, transform_indices = @transform_1, window_bounds = array<i64: 8, 36>}, {transform_indices = @transform_2, window_bounds = array<i64: 1, 8, 256>}]} {
    %0 = tpu.iota {dimensions = array<i32: 1>} : vector<4x256xi32>
    %c16_i32 = arith.constant 16 : i32
    %1 = vector.broadcast %c16_i32 : i32 to vector<4x256xi32>
    %2 = arith.cmpi sge, %0, %1 : vector<4x256xi32>
    %c240_i32 = arith.constant 240 : i32
    %3 = vector.broadcast %c240_i32 : i32 to vector<4x256xi32>
    %4 = arith.cmpi slt, %0, %3 : vector<4x256xi32>
    %c15_i32 = arith.constant 15 : i32
    %5 = vector.broadcast %c15_i32 : i32 to vector<4x256xi32>
    %6 = arith.andi %0, %5 : vector<4x256xi32>
    %c1_i32 = arith.constant 1 : i32
    %7 = vector.broadcast %c1_i32 : i32 to vector<4x256xi32>
    %8 = arith.cmpi sge, %6, %7 : vector<4x256xi32>
    %c14_i32 = arith.constant 14 : i32
    %9 = vector.broadcast %c14_i32 : i32 to vector<4x256xi32>
    %10 = arith.cmpi sle, %6, %9 : vector<4x256xi32>
    %11 = arith.andi %2, %8 : vector<4x256xi1>
    %12 = arith.andi %2, %10 : vector<4x256xi1>
    %13 = arith.andi %4, %8 : vector<4x256xi1>
    %14 = arith.andi %4, %10 : vector<4x256xi1>
    %c0 = arith.constant 0 : index
    %c0_0 = arith.constant 0 : index
    %c0_1 = arith.constant 0 : index
    %15 = vector.load %arg1[%c0, %c0_0, %c0_1] : memref<1x4x256xf32, #tpu.memory_space<vmem>>, vector<1x4x256xf32>
    %16 = vector.shape_cast %15 : vector<1x4x256xf32> to vector<4x256xf32>
    %c17_i32 = arith.constant 17 : i32
    %17 = tpu.dynamic_rotate %16 by %c17_i32 dim 1 : vector<4x256xf32>, i32 -> vector<4x256xf32>
    %cst = arith.constant 0.000000e+00 : f32
    %18 = vector.broadcast %cst : f32 to vector<4x256xf32>
    %19 = arith.select %11, %17, %18 : vector<4x256xi1>, vector<4x256xf32>
    %c16_i32_2 = arith.constant 16 : i32
    %20 = tpu.dynamic_rotate %16 by %c16_i32_2 dim 1 : vector<4x256xf32>, i32 -> vector<4x256xf32>
    %cst_3 = arith.constant 0.000000e+00 : f32
    %21 = vector.broadcast %cst_3 : f32 to vector<4x256xf32>
    %22 = arith.select %2, %20, %21 : vector<4x256xi1>, vector<4x256xf32>
    %c15_i32_4 = arith.constant 15 : i32
    %23 = tpu.dynamic_rotate %16 by %c15_i32_4 dim 1 : vector<4x256xf32>, i32 -> vector<4x256xf32>
    %cst_5 = arith.constant 0.000000e+00 : f32
    %24 = vector.broadcast %cst_5 : f32 to vector<4x256xf32>
    %25 = arith.select %12, %23, %24 : vector<4x256xi1>, vector<4x256xf32>
    %c1_i32_6 = arith.constant 1 : i32
    %26 = tpu.dynamic_rotate %16 by %c1_i32_6 dim 1 : vector<4x256xf32>, i32 -> vector<4x256xf32>
    %cst_7 = arith.constant 0.000000e+00 : f32
    %27 = vector.broadcast %cst_7 : f32 to vector<4x256xf32>
    %28 = arith.select %8, %26, %27 : vector<4x256xi1>, vector<4x256xf32>
    %c255_i32 = arith.constant 255 : i32
    %29 = tpu.dynamic_rotate %16 by %c255_i32 dim 1 : vector<4x256xf32>, i32 -> vector<4x256xf32>
    %cst_8 = arith.constant 0.000000e+00 : f32
    %30 = vector.broadcast %cst_8 : f32 to vector<4x256xf32>
    %31 = arith.select %10, %29, %30 : vector<4x256xi1>, vector<4x256xf32>
    %c241_i32 = arith.constant 241 : i32
    %32 = tpu.dynamic_rotate %16 by %c241_i32 dim 1 : vector<4x256xf32>, i32 -> vector<4x256xf32>
    %cst_9 = arith.constant 0.000000e+00 : f32
    %33 = vector.broadcast %cst_9 : f32 to vector<4x256xf32>
    %34 = arith.select %13, %32, %33 : vector<4x256xi1>, vector<4x256xf32>
    %c240_i32_10 = arith.constant 240 : i32
    %35 = tpu.dynamic_rotate %16 by %c240_i32_10 dim 1 : vector<4x256xf32>, i32 -> vector<4x256xf32>
    %cst_11 = arith.constant 0.000000e+00 : f32
    %36 = vector.broadcast %cst_11 : f32 to vector<4x256xf32>
    %37 = arith.select %4, %35, %36 : vector<4x256xi1>, vector<4x256xf32>
    %c239_i32 = arith.constant 239 : i32
    %38 = tpu.dynamic_rotate %16 by %c239_i32 dim 1 : vector<4x256xf32>, i32 -> vector<4x256xf32>
    %cst_12 = arith.constant 0.000000e+00 : f32
    %39 = vector.broadcast %cst_12 : f32 to vector<4x256xf32>
    %40 = arith.select %14, %38, %39 : vector<4x256xi1>, vector<4x256xf32>
    %41 = tpu.concatenate %19, %22, %25, %28, %16, %31, %34, %37, %40 in 0 : vector<4x256xf32>, vector<4x256xf32>, vector<4x256xf32>, vector<4x256xf32>, vector<4x256xf32>, vector<4x256xf32>, vector<4x256xf32>, vector<4x256xf32>, vector<4x256xf32> -> vector<36x256xf32>
    %c0_13 = arith.constant 0 : index
    %c0_14 = arith.constant 0 : index
    %42 = vector.load %arg2[%c0_13, %c0_14] : memref<8x36xf32, #tpu.memory_space<vmem>>, vector<8x36xf32>
    %cst_15 = arith.constant dense<0.000000e+00> : vector<8x256xf32>
    %43 = tpu.matmul %42, %41, %cst_15 {dimension_numbers = #tpu.dot_dimension_numbers<[1], [0], [0], [1], [0, 0, 1, 1], [], []>} : vector<8x36xf32>, vector<36x256xf32>, vector<8x256xf32> -> vector<8x256xf32>
    %c0_16 = arith.constant 0 : index
    %c0_17 = arith.constant 0 : index
    %c0_18 = arith.constant 0 : index
    %44 = vector.load %arg3[%c0_16, %c0_17, %c0_18] : memref<1x8x256xf32, #tpu.memory_space<vmem>>, vector<1x8x256xf32>
    %45 = vector.shape_cast %44 : vector<1x8x256xf32> to vector<8x256xf32>
    %46 = vector.shape_cast %43 : vector<8x256xf32> to vector<1x8x256xf32>
    tpu.vector_store %arg3[%c0_16, %c0_17, %c0_18], %46 {strides = array<i32>} : memref<1x8x256xf32, #tpu.memory_space<vmem>>, vector<1x8x256xf32>,
    return
  }
  func.func @transform_0(%arg0: i32) -> (i32, i32, i32) {
    %c0_i32 = arith.constant 0 : i32
    %c0_i32_0 = arith.constant 0 : i32
    %c0_i32_1 = arith.constant 0 : i32
    return %arg0, %c0_i32, %c0_i32_0 : i32, i32, i32
  }
  func.func @transform_1(%arg0: i32) -> (i32, i32) {
    %c0_i32 = arith.constant 0 : i32
    %c0_i32_0 = arith.constant 0 : i32
    %c0_i32_1 = arith.constant 0 : i32
    return %c0_i32, %c0_i32_0 : i32, i32
  }
  func.func @transform_2(%arg0: i32) -> (i32, i32, i32) {
    %c0_i32 = arith.constant 0 : i32
    %c0_i32_0 = arith.constant 0 : i32
    %c0_i32_1 = arith.constant 0 : i32
    return %arg0, %c0_i32, %c0_i32_0 : i32, i32, i32
  }
}

</mosaic_0001>

<bundles_post_ra>
// kernel: tpu_custom_call.1
= control target key start
LH: loop header
LB: loop body
LE: loop exit
PB: predicated region body
PF: predicated region fallthrough
CT: control target
= control target key end

     0   :  { %7 = vsyncpa [#allocation3], 0  ;;  %s990_s0 = inlined_call_operand.hbm [shape: f32[2,4,256], index: 0, kind: input, shape index: {}]   ;;  %s991_s1 = inlined_call_operand.hbm [shape: f32[8,36], index: 1, kind: input, shape index: {}]   ;;  %s992_s2 = inlined_call_operand.hbm [shape: f32[2,8,256], index: 2, kind: output, shape index: {}]  }
   0x1   :  { %9 = vsyncpa [#allocation3 + $0x1], 0 }
   0x2   :  { %10 = vsyncpa [#allocation6], 0 }
   0x3   :  { %11 = vsyncpa [#allocation4], 0 }
   0x4   :  { %13 = vsyncpa [#allocation4 + $0x1], 0  ;;  %s721_s9 = smov 0   ;;  %s723_s10 = smov 0  }
   0x5   :  { %s725_s11 = smov 0   ;;  %s727_s12 = smov 0  }
   0x6 LB: > { %s742_s13 = sadd.s32 4294967295, %s692_s12   ;;  %s482_s14 = sadd.s32 4294967294, %s692_s12   ;;  %s692_s12 = sphi %s727_s12, %s1023_s12   ;;  %s688_s11 = sphi %s725_s11, %s1022_s11   ;;  %s684_s10 = sphi %s723_s10, %s1021_s10   ;;  %s680_s9 = sphi %s721_s9, %s1020_s9  }
   0x7   : > { %p39_p0 = scmp.ne.s32.totalorder %s684_s10, %s680_s9  ;;  %p993_p1 = scmp.eq.s32.totalorder %s742_s13, 0 }
   0x8   : > { %p90_p3 = scmp.eq.s32.totalorder %s482_s14, 1  ;;  %p483_p5 = scmp.ge.s32.totalorder %s692_s12, 1 }
   0x9   : > { %p751_p4 = por %p993_p1, %p39_p0  ;;  %p97_p7 = scmp.lt.s32.totalorder %s692_s12, 3 }
   0xa   : > { %p756_p6 = por %p90_p3, %p39_p0  ;;  %s694_s18 = smov [#allocation5]  }
   0xb   : > { %s997_s15 = scalar_select %p751_p4, 1, 0 }
   0xc   : > { %s998_s16 = scalar_select %p756_p6, 1, 0 }
   0xd   : > { %p761_p8 = pnand %p483_p5, %p97_p7  ;;  %s110_s19 = sshll.u32 %s694_s18, 4  ;;  %s111_s19 = int_to_ptr.vmem [resolvable:$true] %s110_s19 }
   0xe   : > { %s769_s20 = sadd.s32 1, %s692_s12   ;;  %s26_s24 = sadd.s32 1, %s688_s11 }
   0xf   : > { %s999_s17 = scalar_select %p761_p8, 1, 0 }
  0x10   : > { %p511_p10 = pneg %p761_p8  ;;  %s23_s22 = ssub.s32 %s692_s12, %s769_s20 }
  0x11   : > { %p779_p12 = scmp.eq.s32.totalorder %s23_s22, 0  ;;  %p33_p13 = scmp.ne.s32.totalorder %s688_s11, %s684_s10 }
  0x12   : > { %p773_p11 = pnand %p511_p10, %p993_p1  ;;  %s581_s25 = scalar_lea.vmem %s111_s19, 128 }
  0x13   : > { %p582_p3 = scmp.ne.s32.totalorder %s111_s19, %s581_s25  ;;  %p589_p9 = scmp.lt.s32.totalorder %s111_s19, %s111_s19 }
  0x14   : > { %p572_p0 = pneg %p773_p11  ;;  %p590_p2 = scmp.lt.s32.totalorder %s581_s25, %s581_s25 }
  0x16   : > { %p584_p5 = pnand %p582_p3, %p572_p0  ;;  %p591_p10 = por %p590_p2, %p589_p9 }
  0x18   : > { %p585_p7 = pneg %p584_p5 }
  0x1a   : > { %p592_p1 = pnand %p591_p10, %p585_p7 }
  0x1c   : > { %595 = shalt.err (!%p592_p1)
}
  0x1d   : > { %514 = dma.hbm_to_vmem [thread:$0]  (!%p773_p11), %s991_s1, 128, %s111_s19, [#allocation6]  }
  0x1e   : > { %s796_s28 = scalar_select %p779_p12, %s688_s11, %s26_s24  }
  0x1f   : > { %p34_p1 = scmp.eq.s32.totalorder %s692_s12, 0  ;;  %p1002_p2 = scmp.eq.s32.totalorder %s742_s13, 1 }
  0x20   : > { %p524_p0 = scmp.lt.s32.totalorder %s692_s12, 2  ;;  %s121_s30 = sand.u32 1, %s688_s11  }
  0x21   : > { %p804_p9 = por %p1002_p2, %p33_p13  ;;  %p35_p3 = por %p34_p1, %p33_p13 }
  0x22   : > { %s486_s3 = sshll.u32 %s121_s30, 3  ;;  %s501_s4 = sshll.u32 %s692_s12, 7 }
  0x23   : > { %s1003_s29 = scalar_select %p804_p9, 1, 0 }
  0x24   : > { %s817_s7 = scalar_lea.hbm %s990_s0, %s501_s4  ;;  %s125_s8 = scalar_lea.vmem [#allocation2], %s486_s3 }
  0x25   : > { %s133_s14 = sshll.u32 %s125_s8, 4  ;;  %p819_p11 = pnand %p524_p0, %p35_p3  ;;  %s134_s14 = int_to_ptr.vmem [resolvable:$true] %s133_s14 }
  0x26   : > { %s122_s19 = scalar_lea.sflag [#allocation3], %s121_s30  ;;  %s596_s21 = scalar_lea.hbm %s817_s7, 128 }
  0x27   : > { %p597_p12 = scmp.ne.s32.totalorder %s817_s7, %s596_s21  ;;  %p598_p13 = pneg %p819_p11 }
  0x28   : > { %s601_s24 = scalar_lea.hbm %s990_s0, 256  ;;  %p602_p10 = scmp.lt.s32.totalorder %s817_s7, %s990_s0 }
  0x29   : > { %p599_p5 = pnand %p598_p13, %p597_p12  ;;  %p603_p1 = scmp.lt.s32.totalorder %s601_s24, %s596_s21 }
  0x2b   : > { %p600_p7 = pneg %p599_p5  ;;  %p604_p2 = por %p603_p1, %p602_p10 }
  0x2d   : > { %p605_p0 = pnand %p604_p2, %p600_p7 }
  0x2f   : > { %608 = shalt.err (!%p605_p0)
}
  0x30   : > { %s609_s27 = scalar_lea.vmem %s134_s14, 128  ;;  %s695_s30 = smov [#allocation2]  }
  0x31   : > { %p610_p3 = scmp.ne.s32.totalorder %s134_s14, %s609_s27  ;;  %s614_s3 = sshll.u32 %s695_s30, 4  ;;  %s615_s3 = int_to_ptr.vmem [resolvable:$false] %s614_s3 }
  0x32   : > { %s616_s4 = scalar_lea.vmem %s615_s3, 256  ;;  %p617_p12 = scmp.lt.s32.totalorder %s134_s14, %s615_s3 }
  0x33   : > { %p612_p6 = pnand %p610_p3, %p598_p13  ;;  %p618_p5 = scmp.lt.s32.totalorder %s616_s4, %s609_s27 }
  0x35   : > { %p613_p9 = pneg %p612_p6  ;;  %p619_p4 = por %p618_p5, %p617_p12 }
  0x37   : > { %p620_p8 = pnand %p619_p4, %p613_p9 }
  0x39   : > { %623 = shalt.err (!%p620_p8)
}
  0x3a   : > { %518 = dma.hbm_to_vmem [thread:$0]  (!%p819_p11), %s817_s7, 128, %s134_s14, %s122_s19  }
  0x3b   : > { %p1005_p7 = scmp.ne.s32.totalorder %s999_s17, 0 }
  0x3c   : > { %s840_s5 = sand.u32 (!%p1005_p7), 1, %s684_s10   ;;  %p1006_p6 = scmp.ne.s32.totalorder (!%p1005_p7), %s997_s15, 0 }
  0x3d   : > { %142 = sbr.rel (%p1005_p7) target bundleno = 427 (0x1ab), region = 28  ;;  %s490_s6 = sshll.u32 (!%p1005_p7), %s840_s5, 3 }
  0x3e   : > { %s145_s8 = scalar_lea.sflag (!%p1005_p7), [#allocation3], %s840_s5  ;;  %s148_s21 = scalar_lea.vmem (!%p1005_p7), [#allocation2], %s490_s6 }
  0x42   : > { %667 = dma.done.wait (%p1006_p6), %s145_s8, 128  }
  0x43   : > { %669 = vsyncadd (%p1006_p6), %s145_s8, 4294967168  ;;  %p1007_p4 = scmp.eq.s32.totalorder %s742_s13, 0 }
  0x45   : > { %671 = dma.done.wait (%p1007_p4), [#allocation6], 128   ;;  %p1008_p8 = pmov %p1007_p4 }
  0x46   : > { %v852_v0 = vld [vmem:[%s148_s21] sm:$0xff]  ;;  %s696_s17 = smov 111   ;;  %s697_s7 = smov 112   ;;  %v701_v2 = vmov 0.0   ;;  %v173_v3 = vlaneseq  ;;  %vm294_vm5 = vcmask 1043456   ;;  %v303_v11 = vld [vmem:[#allocation5] sm:$0xff] }
  0x47   : > { %673 = vsyncadd (%p1008_p8), [#allocation6], 4294967168  ;;  %261 = vrot.lane.b32.xlu1 %v852_v0, %s696_s17  ;;  %252 = vrot.lane.b32.xlu0 %v852_v0, %s697_s7  ;;  %v858_v1 = vcombine.high %v852_v0, %v852_v0  ;;  %s698_s15 = smov 127   ;;  %s699_s14 = smov 113  }
  0x48   : > { %s700_s18 = smov 1   ;;  %378 = vmatprep.mubr.f32.mxu0 %v701_v2  ;;  %s702_s19 = smov 15   ;;  %v874_v4 = vand.u32 127, %v173_v3 }
  0x49   : > { %s703_s22 = smov 16   ;;  %s704_s23 = smov 17  }
  0x4a   : > { %v175_v5 = vadd.s32 128, %v874_v4  ;;  %v180_v7 = vand.u32 15, %v874_v4  ;;  %vm265_vm2 = vcmp.lt.s32.totalorder %v874_v4, 111  ;;  %vm238_vm6 = vcmp.lt.s32.totalorder %v874_v4, 127  ;;  %s492_s24 = sshll.u32 %s840_s5, 4  ;;  %s502_s27 = sshll.u32 %s742_s13, 8 }
  0x4b   : > { %234 = vrot.lane.b32.xlu0 %v852_v0, %s698_s15  ;;  %263 = vrot.lane.b32.xlu1 %v858_v1, %s696_s17  ;;  %vm256_vm7 = vcmp.lt.s32.totalorder %v874_v4, 112  ;;  %vm247_vm9 = vcmp.lt.s32.totalorder %v874_v4, 113  ;;  %vm229_vm12 = vcmp.lt.s32.totalorder %v874_v4, 1  ;;  %vm176_vm13 = vcmp.ge.s32.totalorder %v874_v4, 16  ;;  %s172_s25 = scalar_lea.vmem [#allocation7], %s492_s24  ;;  %s400_s4 = scalar_lea.hbm %s992_s2, %s502_s27 }
  0x4c   : > { %v181_v6 = vand.u32 15, %v175_v5  ;;  %vm179_vm0 = vcmp.lt.s32.totalorder %v175_v5, 240  ;;  %vm886_vm4 = vcmp.le.s32.totalorder %v180_v7, 14  ;;  %vm906_vm10 = vcmp.ge.s32.totalorder %v180_v7, 1  ;;  %s402_s26 = sshll.u32 %s172_s25, 4  ;;  %s388_s6 = scalar_lea.sflag [#allocation4], %s840_s5  ;;  %s950_s26 = int_to_ptr.vmem [resolvable:$true] %s402_s26 }
  0x4d   : > { %vm220_vm14 = vcmp.lt.s32.totalorder %v874_v4, 15  ;;  %vm188_vm15 = vmand %vm176_vm13, %vm886_vm4  ;;  %s624_s8 = scalar_lea.vmem %s950_s26, 256  ;;  %p1017_p11 = scmp.ne.s32.totalorder %s1003_s29, 0 }
  0x4e   : > { %vm878_vm1 = vcmp.le.s32.totalorder %v181_v6, 14  ;;  %vm896_vm8 = vcmp.ge.s32.totalorder %v181_v6, 1  ;;  %p625_p9 = scmp.ne.s32.totalorder %s950_s26, %s624_s8  ;;  %s705_s13 = smov [#allocation7]  }
  0x4f   : > { %236 = vrot.lane.b32.xlu1 %v858_v1, %s698_s15  ;;  %254 = vrot.lane.b32.xlu0 %v858_v1, %s697_s7  ;;  %vm193_vm3 = vmand %vm179_vm0, %vm878_vm1  ;;  %s628_s21 = sshll.u32 %s705_s13, 4  ;;  %s629_s21 = int_to_ptr.vmem [resolvable:$false] %s628_s21 }
  0x50   : > { %vm191_vm11 = vmand %vm179_vm0, %vm896_vm8  ;;  %p626_p13 = pnand %p625_p9, %p1017_p11  ;;  %s630_s17 = scalar_lea.vmem %s629_s21, 512 }
  0x51   : > { %p631_p1 = scmp.lt.s32.totalorder %s950_s26, %s629_s21  ;;  %p632_p2 = scmp.lt.s32.totalorder %s630_s17, %s624_s8 }
  0x52   : > { %p627_p10 = pneg %p626_p13 }
  0x53   : > { %245 = vrot.lane.b32.xlu1 %v858_v1, %s699_s14  ;;  %243 = vrot.lane.b32.xlu0 %v852_v0, %s699_s14  ;;  %p633_p0 = por %p632_p2, %p631_p1 }
  0x55   : > { %p634_p3 = pnand %p633_p0, %p627_p10 }
  0x57   : > { %227 = vrot.lane.b32.xlu1 %v858_v1, %s700_s18  ;;  %225 = vrot.lane.b32.xlu0 %v852_v0, %s700_s18 }
  0x5b   : > { %218 = vrot.lane.b32.xlu1 %v858_v1, %s702_s19  ;;  %216 = vrot.lane.b32.xlu0 %v852_v0, %s702_s19 }
  0x5f   : > { %209 = vrot.lane.b32.xlu1 %v858_v1, %s703_s22  ;;  %207 = vrot.lane.b32.xlu0 %v852_v0, %s703_s22 }
  0x63   : > { %200 = vrot.lane.b32.xlu1 %v858_v1, %s704_s23  ;;  %198 = vrot.lane.b32.xlu0 %v852_v0, %s704_s23 }
  0xb9   : > { %v262_v8 = vpop.permute.xlu1 %261  ;;  %v253_v9 = vpop.permute.xlu0 %252 }
  0xbd   : > { %v235_v12 = vpop.permute.xlu0 %234  ;;  %v264_v13 = vpop.permute.xlu1 %263 }
  0xbe   : > { %v266_v14 = vsel %vm265_vm2, %v262_v8, %v264_v13  ;;  %v267_v15 = vsel %vm265_vm2, %v264_v13, %v262_v8  ;;  %vm202_vm2 = vcmp.lt.s32.totalorder %v874_v4, 17 }
  0xbf   : > { %v269_v16 = vsel %vm193_vm3, %v267_v15, 0.0  ;;  %v268_v17 = vsel %vm886_vm4, %v266_v14, 0.0  ;;  %vm304_vm3 = vcmask 293888  }
  0xc0   : > { %493 = vmatprep.subr.msk.mxu0 %vm294_vm5, %v269_v16 }
  0xc1   : > { %494 = vmatpush1.msk.msra.mxu0 %vm294_vm5, %v268_v17  ;;  %v237_v18 = vpop.permute.xlu1 %236  ;;  %v255_v19 = vpop.permute.xlu0 %254 }
  0xc2   : > { %v239_v21 = vsel %vm238_vm6, %v235_v12, %v237_v18  ;;  %v240_v22 = vsel %vm238_vm6, %v237_v18, %v235_v12  ;;  %v257_v23 = vsel %vm256_vm7, %v253_v9, %v255_v19  ;;  %v258_v24 = vsel %vm256_vm7, %v255_v19, %v253_v9 }
  0xc3   : > { %v242_v25 = vsel %vm878_vm1, %v240_v22, 0.0  ;;  %v260_v26 = vsel %vm179_vm0, %v258_v24, 0.0  ;;  %v241_v27 = vsel %vm886_vm4, %v239_v21, 0.0  ;;  %v290_v29 = vrot.slane %v257_v23, 4 }
  0xc4   : > { %v285_v32 = vrot.slane %v242_v25, 4  ;;  %v291_v33 = vrot.slane %v260_v26, 4  ;;  %v284_v36 = vrot.slane %v241_v27, 4  ;;  %vm211_vm0 = vcmp.lt.s32.totalorder %v874_v4, 16 }
  0xc5   : > { %v246_v30 = vpop.permute.xlu1 %245  ;;  %v244_v31 = vpop.permute.xlu0 %243 }
  0xc6   : > { %v248_v34 = vsel %vm247_vm9, %v244_v31, %v246_v30  ;;  %v249_v35 = vsel %vm247_vm9, %v246_v30, %v244_v31  ;;  %v300_v45 = vsel %vm294_vm5, %v858_v1, %v285_v32  ;;  %v299_v48 = vsel %vm294_vm5, %v852_v0, %v284_v36 }
  0xc7   : > { %v250_v37 = vsel %vm906_vm10, %v248_v34, 0.0  ;;  %v251_v38 = vsel %vm191_vm11, %v249_v35, 0.0 }
  0xc8   : > { %v302_v39 = vsel %vm294_vm5, %v251_v38, %v291_v33  ;;  %v301_v40 = vsel %vm294_vm5, %v250_v37, %v290_v29 }
  0xc9   : > { %v228_v41 = vpop.permute.xlu1 %227  ;;  %338 = vmatprep.subr.mxu0 %v302_v39  ;;  %v226_v42 = vpop.permute.xlu0 %225 }
  0xca   : > { %v230_v43 = vsel %vm229_vm12, %v226_v42, %v228_v41  ;;  %v231_v44 = vsel %vm229_vm12, %v228_v41, %v226_v42  ;;  %339 = vmatpush1.msra.mxu0 %v301_v40 }
  0xcb   : > { %v232_v46 = vsel %vm906_vm10, %v231_v44, 0.0  ;;  %v233_v47 = vsel %vm896_vm8, %v230_v43, 0.0  ;;  %340 = vmatprep.subr.mxu0 %v300_v45 }
  0xcc   : > { %341 = vmatpush1.msra.mxu0 %v299_v48  ;;  %v278_v51 = vrot.slane %v232_v46, 4  ;;  %v279_v52 = vrot.slane %v233_v47, 4 }
  0xcd   : > { %v219_v49 = vpop.permute.xlu1 %218  ;;  %v217_v50 = vpop.permute.xlu0 %216 }
  0xce   : > { %v221_v53 = vsel %vm220_vm14, %v217_v50, %v219_v49  ;;  %v222_v54 = vsel %vm220_vm14, %v219_v49, %v217_v50 }
  0xcf   : > { %v223_v55 = vsel %vm188_vm15, %v222_v54, 0.0  ;;  %v224_v56 = vsel %vm878_vm1, %v221_v53, 0.0  ;;  %vm186_vm1 = vmand %vm176_vm13, %vm906_vm10 }
  0xd0   : > { %v298_v57 = vsel %vm294_vm5, %v224_v56, %v279_v52  ;;  %v297_v58 = vsel %vm294_vm5, %v223_v55, %v278_v51 }
  0xd1   : > { %v210_v59 = vpop.permute.xlu1 %209  ;;  %342 = vmatprep.subr.mxu0 %v298_v57  ;;  %v208_v60 = vpop.permute.xlu0 %207 }
  0xd2   : > { %v213_v61 = vsel %vm211_vm0, %v210_v59, %v208_v60  ;;  %343 = vmatpush1.msra.mxu0 %v297_v58  ;;  %v212_v62 = vsel %vm211_vm0, %v208_v60, %v210_v59 }
  0xd3   : > { %v214_v63 = vsel %vm176_vm13, %v213_v61, 0.0  ;;  %v273_v3 = vrot.slane %v212_v62, 4 }
  0xd4   : > { %v272_v2 = vrot.slane %v214_v63, 4 }
  0xd5   : > { %v201_v0 = vpop.permute.xlu1 %200  ;;  %v199_v1 = vpop.permute.xlu0 %198 }
  0xd6   : > { %v203_v5 = vsel %vm202_vm2, %v199_v1, %v201_v0  ;;  %v204_v6 = vsel %vm202_vm2, %v201_v0, %v199_v1 }
  0xd7   : > { %v205_v7 = vsel %vm186_vm1, %v204_v6, 0.0  ;;  %v206_v8 = vsel %vm896_vm8, %v203_v5, 0.0 }
  0xd8   : > { %v296_v9 = vsel %vm294_vm5, %v206_v8, %v273_v3  ;;  %v295_v10 = vsel %vm294_vm5, %v205_v7, %v272_v2 }
  0xd9   : > { %344 = vmatprep.subr.mxu0 %v296_v9 }
  0xda   : > { %345 = vmatpush1.msra.mxu0 %v295_v10 }
  0xdb   : > { %495 = vmatmul.mubr.msk.f32.vlgmr.msra.gmra.mxu0 %vm304_vm3, %v303_v11 }
 0x19b   : > { %v380_v4 = vpop.f32.mrf.mxu0 }
 0x19c   : > { %385 = vst [vmem:[%s172_s25] sm:$0xff] %v380_v4 }
 0x19d   : > { %v382_v12 = vpop.f32.mrf.mxu0 }
 0x19e   : > { %386 = vst [vmem:[%s172_s25 + $0x8] sm:$0xff] %v382_v12 }
 0x19f   : > { %637 = shalt.err (!%p634_p3)
}
 0x1a0   : > { %s638_s7 = scalar_lea.hbm %s400_s4, 256  ;;  %s642_s14 = scalar_lea.hbm %s992_s2, 512 }
 0x1a1   : > { %p639_p12 = scmp.ne.s32.totalorder %s400_s4, %s638_s7  ;;  %p643_p6 = scmp.lt.s32.totalorder %s400_s4, %s992_s2 }
 0x1a2   : > { %p644_p4 = scmp.lt.s32.totalorder %s642_s14, %s638_s7 }
 0x1a3   : > { %p640_p5 = pnand %p639_p12, %p1017_p11 }
 0x1a4   : > { %p645_p8 = por %p644_p4, %p643_p6 }
 0x1a5   : > { %p641_p7 = pneg %p640_p5 }
 0x1a7   : > { %p646_p9 = pnand %p645_p8, %p641_p7 }
 0x1a9   : > { %649 = shalt.err (!%p646_p9)
}
 0x1aa   : > { %509 = dma.vmem_to_hbm [thread:$0]  (%p1017_p11), %s950_s26, 256, %s400_s4, %s388_s6  }
 0x1ab PF: > { %s414_s22 = sand.u32 1, %s680_s9   ;;  %p1018_p13 = scmp.ne.s32.totalorder %s998_s16, 0 }
 0x1ac   : > { %p1019_p10 = scmp.ge.s32.totalorder %s692_s12, 2  ;;  %s415_s23 = scalar_lea.sflag [#allocation4], %s414_s22 }
 0x1ae   : > { %p520_p1 = pnand %p1019_p10, %p1018_p13 }
 0x1b0   : > { %p521_p2 = pneg %p520_p1 }
 0x1b2   : > { %675 = dma.done.wait (%p521_p2), %s415_s23, 256  }
 0x1b3   : > { %677 = vsyncadd (%p521_p2), %s415_s23, 4294967040  ;;  %p16_p0 = scmp.ge.s32.totalorder %s769_s20, 4   ;;  %s1020_s9 = smov %s684_s10 }
 0x1b4   : > { %s1021_s10 = smov %s688_s11  ;;  %s1022_s11 = smov %s796_s28 }
 0x1b5   : > { %s1023_s12 = smov %s769_s20  ;;  %18 = sbr.rel (!%p16_p0) target bundleno = 6 (0x6), region = 77 }
 0x1ba   :  { %420 = vsyncpa [#allocation3], 1 }
 0x1bb   :  { %422 = vsyncpa [#allocation3 + $0x1], 1 }
 0x1bc   :  { %423 = vsyncpa [#allocation6], 1 }
 0x1bd   :  { %424 = vsyncpa [#allocation4], 1 }
 0x1be   :  { %426 = vsyncpa [#allocation4 + $0x1], 1 }

// kernel: tpu_custom_call.1
= control target key start
LH: loop header
LB: loop body
LE: loop exit
PB: predicated region body
PF: predicated region fallthrough
CT: control target
= control target key end

     0   :  { %7 = vsyncpa [#allocation3], 0  ;;  %s990_s0 = inlined_call_operand.hbm [shape: f32[2,4,256], index: 0, kind: input, shape index: {}]   ;;  %s991_s1 = inlined_call_operand.hbm [shape: f32[8,36], index: 1, kind: input, shape index: {}]   ;;  %s992_s2 = inlined_call_operand.hbm [shape: f32[2,8,256], index: 2, kind: output, shape index: {}]  }
   0x1   :  { %9 = vsyncpa [#allocation3 + $0x1], 0 }
   0x2   :  { %10 = vsyncpa [#allocation6], 0 }
   0x3   :  { %11 = vsyncpa [#allocation4], 0 }
   0x4   :  { %13 = vsyncpa [#allocation4 + $0x1], 0  ;;  %s721_s9 = smov 0   ;;  %s723_s10 = smov 0  }
   0x5   :  { %s725_s11 = smov 0   ;;  %s727_s12 = smov 0  }
   0x6 LB: > { %s742_s13 = sadd.s32 4294967295, %s692_s12   ;;  %s482_s14 = sadd.s32 4294967294, %s692_s12   ;;  %s692_s12 = sphi %s727_s12, %s1023_s12   ;;  %s688_s11 = sphi %s725_s11, %s1022_s11   ;;  %s684_s10 = sphi %s723_s10, %s1021_s10   ;;  %s680_s9 = sphi %s721_s9, %s1020_s9  }
   0x7   : > { %p39_p0 = scmp.ne.s32.totalorder %s684_s10, %s680_s9  ;;  %p993_p1 = scmp.eq.s32.totalorder %s742_s13, 0 }
   0x8   : > { %p90_p3 = scmp.eq.s32.totalorder %s482_s14, 1  ;;  %p483_p5 = scmp.ge.s32.totalorder %s692_s12, 1 }
   0x9   : > { %p751_p4 = por %p993_p1, %p39_p0  ;;  %p97_p7 = scmp.lt.s32.totalorder %s692_s12, 3 }
   0xa   : > { %p756_p6 = por %p90_p3, %p39_p0  ;;  %s694_s18 = smov [#allocation5]  }
   0xb   : > { %s997_s15 = scalar_select %p751_p4, 1, 0 }
   0xc   : > { %s998_s16 = scalar_select %p756_p6, 1, 0 }
   0xd   : > { %p761_p8 = pnand %p483_p5, %p97_p7  ;;  %s110_s19 = sshll.u32 %s694_s18, 4  ;;  %s111_s19 = int_to_ptr.vmem [resolvable:$true] %s110_s19 }
   0xe   : > { %s769_s20 = sadd.s32 1, %s692_s12   ;;  %s26_s24 = sadd.s32 1, %s688_s11 }
   0xf   : > { %s999_s17 = scalar_select %p761_p8, 1, 0 }
  0x10   : > { %p511_p10 = pneg %p761_p8  ;;  %s23_s22 = ssub.s32 %s692_s12, %s769_s20 }
  0x11   : > { %p779_p12 = scmp.eq.s32.totalorder %s23_s22, 0  ;;  %p33_p13 = scmp.ne.s32.totalorder %s688_s11, %s684_s10 }
  0x12   : > { %p773_p11 = pnand %p511_p10, %p993_p1  ;;  %s581_s25 = scalar_lea.vmem %s111_s19, 128 }
  0x13   : > { %p582_p3 = scmp.ne.s32.totalorder %s111_s19, %s581_s25  ;;  %p589_p9 = scmp.lt.s32.totalorder %s111_s19, %s111_s19 }
  0x14   : > { %p572_p0 = pneg %p773_p11  ;;  %p590_p2 = scmp.lt.s32.totalorder %s581_s25, %s581_s25 }
  0x16   : > { %p584_p5 = pnand %p582_p3, %p572_p0  ;;  %p591_p10 = por %p590_p2, %p589_p9 }
  0x18   : > { %p585_p7 = pneg %p584_p5 }
  0x1a   : > { %p592_p1 = pnand %p591_p10, %p585_p7 }
  0x1c   : > { %595 = shalt.err (!%p592_p1)
}
  0x1d   : > { %514 = dma.hbm_to_vmem [thread:$0]  (!%p773_p11), %s991_s1, 128, %s111_s19, [#allocation6]  }
  0x1e   : > { %s796_s28 = scalar_select %p779_p12, %s688_s11, %s26_s24  }
  0x1f   : > { %p34_p1 = scmp.eq.s32.totalorder %s692_s12, 0  ;;  %p1002_p2 = scmp.eq.s32.totalorder %s742_s13, 1 }
  0x20   : > { %p524_p0 = scmp.lt.s32.totalorder %s692_s12, 2  ;;  %s121_s30 = sand.u32 1, %s688_s11  }
  0x21   : > { %p804_p9 = por %p1002_p2, %p33_p13  ;;  %p35_p3 = por %p34_p1, %p33_p13 }
  0x22   : > { %s486_s3 = sshll.u32 %s121_s30, 3  ;;  %s501_s4 = sshll.u32 %s692_s12, 7 }
  0x23   : > { %s1003_s29 = scalar_select %p804_p9, 1, 0 }
  0x24   : > { %s817_s7 = scalar_lea.hbm %s990_s0, %s501_s4  ;;  %s125_s8 = scalar_lea.vmem [#allocation2], %s486_s3 }
  0x25   : > { %s133_s14 = sshll.u32 %s125_s8, 4  ;;  %p819_p11 = pnand %p524_p0, %p35_p3  ;;  %s134_s14 = int_to_ptr.vmem [resolvable:$true] %s133_s14 }
  0x26   : > { %s122_s19 = scalar_lea.sflag [#allocation3], %s121_s30  ;;  %s596_s21 = scalar_lea.hbm %s817_s7, 128 }
  0x27   : > { %p597_p12 = scmp.ne.s32.totalorder %s817_s7, %s596_s21  ;;  %p598_p13 = pneg %p819_p11 }
  0x28   : > { %s601_s24 = scalar_lea.hbm %s990_s0, 256  ;;  %p602_p10 = scmp.lt.s32.totalorder %s817_s7, %s990_s0 }
  0x29   : > { %p599_p5 = pnand %p598_p13, %p597_p12  ;;  %p603_p1 = scmp.lt.s32.totalorder %s601_s24, %s596_s21 }
  0x2b   : > { %p600_p7 = pneg %p599_p5  ;;  %p604_p2 = por %p603_p1, %p602_p10 }
  0x2d   : > { %p605_p0 = pnand %p604_p2, %p600_p7 }
  0x2f   : > { %608 = shalt.err (!%p605_p0)
}
  0x30   : > { %s609_s27 = scalar_lea.vmem %s134_s14, 128  ;;  %s695_s30 = smov [#allocation2]  }
  0x31   : > { %p610_p3 = scmp.ne.s32.totalorder %s134_s14, %s609_s27  ;;  %s614_s3 = sshll.u32 %s695_s30, 4  ;;  %s615_s3 = int_to_ptr.vmem [resolvable:$false] %s614_s3 }
  0x32   : > { %s616_s4 = scalar_lea.vmem %s615_s3, 256  ;;  %p617_p12 = scmp.lt.s32.totalorder %s134_s14, %s615_s3 }
  0x33   : > { %p612_p6 = pnand %p610_p3, %p598_p13  ;;  %p618_p5 = scmp.lt.s32.totalorder %s616_s4, %s609_s27 }
  0x35   : > { %p613_p9 = pneg %p612_p6  ;;  %p619_p4 = por %p618_p5, %p617_p12 }
  0x37   : > { %p620_p8 = pnand %p619_p4, %p613_p9 }
  0x39   : > { %623 = shalt.err (!%p620_p8)
}
  0x3a   : > { %518 = dma.hbm_to_vmem [thread:$0]  (!%p819_p11), %s817_s7, 128, %s134_s14, %s122_s19  }
  0x3b   : > { %p1005_p7 = scmp.ne.s32.totalorder %s999_s17, 0 }
  0x3c   : > { %s840_s5 = sand.u32 (!%p1005_p7), 1, %s684_s10   ;;  %p1006_p6 = scmp.ne.s32.totalorder (!%p1005_p7), %s997_s15, 0 }
  0x3d   : > { %142 = sbr.rel (%p1005_p7) target bundleno = 427 (0x1ab), region = 28  ;;  %s490_s6 = sshll.u32 (!%p1005_p7), %s840_s5, 3 }
  0x3e   : > { %s145_s8 = scalar_lea.sflag (!%p1005_p7), [#allocation3], %s840_s5  ;;  %s148_s21 = scalar_lea.vmem (!%p1005_p7), [#allocation2], %s490_s6 }
  0x42   : > { %667 = dma.done.wait (%p1006_p6), %s145_s8, 128  }
  0x43   : > { %669 = vsyncadd (%p1006_p6), %s145_s8, 4294967168  ;;  %p1007_p4 = scmp.eq.s32.totalorder %s742_s13, 0 }
  0x45   : > { %671 = dma.done.wait (%p1007_p4), [#allocation6], 128   ;;  %p1008_p8 = pmov %p1007_p4 }
  0x46   : > { %v852_v0 = vld [vmem:[%s148_s21] sm:$0xff]  ;;  %s696_s17 = smov 111   ;;  %s697_s7 = smov 112   ;;  %v701_v2 = vmov 0.0   ;;  %v173_v3 = vlaneseq  ;;  %vm294_vm5 = vcmask 1043456   ;;  %v303_v11 = vld [vmem:[#allocation5] sm:$0xff] }
  0x47   : > { %673 = vsyncadd (%p1008_p8), [#allocation6], 4294967168  ;;  %261 = vrot.lane.b32.xlu1 %v852_v0, %s696_s17  ;;  %252 = vrot.lane.b32.xlu0 %v852_v0, %s697_s7  ;;  %v858_v1 = vcombine.high %v852_v0, %v852_v0  ;;  %s698_s15 = smov 127   ;;  %s699_s14 = smov 113  }
  0x48   : > { %s700_s18 = smov 1   ;;  %378 = vmatprep.mubr.f32.mxu0 %v701_v2  ;;  %s702_s19 = smov 15   ;;  %v874_v4 = vand.u32 127, %v173_v3 }
  0x49   : > { %s703_s22 = smov 16   ;;  %s704_s23 = smov 17  }
  0x4a   : > { %v175_v5 = vadd.s32 128, %v874_v4  ;;  %v180_v7 = vand.u32 15, %v874_v4  ;;  %vm265_vm2 = vcmp.lt.s32.totalorder %v874_v4, 111  ;;  %vm238_vm6 = vcmp.lt.s32.totalorder %v874_v4, 127  ;;  %s492_s24 = sshll.u32 %s840_s5, 4  ;;  %s502_s27 = sshll.u32 %s742_s13, 8 }
  0x4b   : > { %234 = vrot.lane.b32.xlu0 %v852_v0, %s698_s15  ;;  %263 = vrot.lane.b32.xlu1 %v858_v1, %s696_s17  ;;  %vm256_vm7 = vcmp.lt.s32.totalorder %v874_v4, 112  ;;  %vm247_vm9 = vcmp.lt.s32.totalorder %v874_v4, 113  ;;  %vm229_vm12 = vcmp.lt.s32.totalorder %v874_v4, 1  ;;  %vm176_vm13 = vcmp.ge.s32.totalorder %v874_v4, 16  ;;  %s172_s25 = scalar_lea.vmem [#allocation7], %s492_s24  ;;  %s400_s4 = scalar_lea.hbm %s992_s2, %s502_s27 }
  0x4c   : > { %v181_v6 = vand.u32 15, %v175_v5  ;;  %vm179_vm0 = vcmp.lt.s32.totalorder %v175_v5, 240  ;;  %vm886_vm4 = vcmp.le.s32.totalorder %v180_v7, 14  ;;  %vm906_vm10 = vcmp.ge.s32.totalorder %v180_v7, 1  ;;  %s402_s26 = sshll.u32 %s172_s25, 4  ;;  %s388_s6 = scalar_lea.sflag [#allocation4], %s840_s5  ;;  %s950_s26 = int_to_ptr.vmem [resolvable:$true] %s402_s26 }
  0x4d   : > { %vm220_vm14 = vcmp.lt.s32.totalorder %v874_v4, 15  ;;  %vm188_vm15 = vmand %vm176_vm13, %vm886_vm4  ;;  %s624_s8 = scalar_lea.vmem %s950_s26, 256  ;;  %p1017_p11 = scmp.ne.s32.totalorder %s1003_s29, 0 }
  0x4e   : > { %vm878_vm1 = vcmp.le.s32.totalorder %v181_v6, 14  ;;  %vm896_vm8 = vcmp.ge.s32.totalorder %v181_v6, 1  ;;  %p625_p9 = scmp.ne.s32.totalorder %s950_s26, %s624_s8  ;;  %s705_s13 = smov [#allocation7]  }
  0x4f   : > { %236 = vrot.lane.b32.xlu1 %v858_v1, %s698_s15  ;;  %254 = vrot.lane.b32.xlu0 %v858_v1, %s697_s7  ;;  %vm193_vm3 = vmand %vm179_vm0, %vm878_vm1  ;;  %s628_s21 = sshll.u32 %s705_s13, 4  ;;  %s629_s21 = int_to_ptr.vmem [resolvable:$false] %s628_s21 }
  0x50   : > { %vm191_vm11 = vmand %vm179_vm0, %vm896_vm8  ;;  %p626_p13 = pnand %p625_p9, %p1017_p11  ;;  %s630_s17 = scalar_lea.vmem %s629_s21, 512 }
  0x51   : > { %p631_p1 = scmp.lt.s32.totalorder %s950_s26, %s629_s21  ;;  %p632_p2 = scmp.lt.s32.totalorder %s630_s17, %s624_s8 }
  0x52   : > { %p627_p10 = pneg %p626_p13 }
  0x53   : > { %245 = vrot.lane.b32.xlu1 %v858_v1, %s699_s14  ;;  %243 = vrot.lane.b32.xlu0 %v852_v0, %s699_s14  ;;  %p633_p0 = por %p632_p2, %p631_p1 }
  0x55   : > { %p634_p3 = pnand %p633_p0, %p627_p10 }
  0x57   : > { %227 = vrot.lane.b32.xlu1 %v858_v1, %s700_s18  ;;  %225 = vrot.lane.b32.xlu0 %v852_v0, %s700_s18 }
  0x5b   : > { %218 = vrot.lane.b32.xlu1 %v858_v1, %s702_s19  ;;  %216 = vrot.lane.b32.xlu0 %v852_v0, %s702_s19 }
  0x5f   : > { %209 = vrot.lane.b32.xlu1 %v858_v1, %s703_s22  ;;  %207 = vrot.lane.b32.xlu0 %v852_v0, %s703_s22 }
  0x63   : > { %200 = vrot.lane.b32.xlu1 %v858_v1, %s704_s23  ;;  %198 = vrot.lane.b32.xlu0 %v852_v0, %s704_s23 }
  0xb9   : > { %v262_v8 = vpop.permute.xlu1 %261  ;;  %v253_v9 = vpop.permute.xlu0 %252 }
  0xbd   : > { %v235_v12 = vpop.permute.xlu0 %234  ;;  %v264_v13 = vpop.permute.xlu1 %263 }
  0xbe   : > { %v266_v14 = vsel %vm265_vm2, %v262_v8, %v264_v13  ;;  %v267_v15 = vsel %vm265_vm2, %v264_v13, %v262_v8  ;;  %vm202_vm2 = vcmp.lt.s32.totalorder %v874_v4, 17 }
  0xbf   : > { %v269_v16 = vsel %vm193_vm3, %v267_v15, 0.0  ;;  %v268_v17 = vsel %vm886_vm4, %v266_v14, 0.0  ;;  %vm304_vm3 = vcmask 293888  }
  0xc0   : > { %493 = vmatprep.subr.msk.mxu0 %vm294_vm5, %v269_v16 }
  0xc1   : > { %494 = vmatpush1.msk.msra.mxu0 %vm294_vm5, %v268_v17  ;;  %v237_v18 = vpop.permute.xlu1 %236  ;;  %v255_v19 = vpop.permute.xlu0 %254 }
  0xc2   : > { %v239_v21 = vsel %vm238_vm6, %v235_v12, %v237_v18  ;;  %v240_v22 = vsel %vm238_vm6, %v237_v18, %v235_v12  ;;  %v257_v23 = vsel %vm256_vm7, %v253_v9, %v255_v19  ;;  %v258_v24 = vsel %vm256_vm7, %v255_v19, %v253_v9 }
  0xc3   : > { %v242_v25 = vsel %vm878_vm1, %v240_v22, 0.0  ;;  %v260_v26 = vsel %vm179_vm0, %v258_v24, 0.0  ;;  %v241_v27 = vsel %vm886_vm4, %v239_v21, 0.0  ;;  %v290_v29 = vrot.slane %v257_v23, 4 }
  0xc4   : > { %v285_v32 = vrot.slane %v242_v25, 4  ;;  %v291_v33 = vrot.slane %v260_v26, 4  ;;  %v284_v36 = vrot.slane %v241_v27, 4  ;;  %vm211_vm0 = vcmp.lt.s32.totalorder %v874_v4, 16 }
  0xc5   : > { %v246_v30 = vpop.permute.xlu1 %245  ;;  %v244_v31 = vpop.permute.xlu0 %243 }
  0xc6   : > { %v248_v34 = vsel %vm247_vm9, %v244_v31, %v246_v30  ;;  %v249_v35 = vsel %vm247_vm9, %v246_v30, %v244_v31  ;;  %v300_v45 = vsel %vm294_vm5, %v858_v1, %v285_v32  ;;  %v299_v48 = vsel %vm294_vm5, %v852_v0, %v284_v36 }
  0xc7   : > { %v250_v37 = vsel %vm906_vm10, %v248_v34, 0.0  ;;  %v251_v38 = vsel %vm191_vm11, %v249_v35, 0.0 }
  0xc8   : > { %v302_v39 = vsel %vm294_vm5, %v251_v38, %v291_v33  ;;  %v301_v40 = vsel %vm294_vm5, %v250_v37, %v290_v29 }
  0xc9   : > { %v228_v41 = vpop.permute.xlu1 %227  ;;  %338 = vmatprep.subr.mxu0 %v302_v39  ;;  %v226_v42 = vpop.permute.xlu0 %225 }
  0xca   : > { %v230_v43 = vsel %vm229_vm12, %v226_v42, %v228_v41  ;;  %v231_v44 = vsel %vm229_vm12, %v228_v41, %v226_v42  ;;  %339 = vmatpush1.msra.mxu0 %v301_v40 }
  0xcb   : > { %v232_v46 = vsel %vm906_vm10, %v231_v44, 0.0  ;;  %v233_v47 = vsel %vm896_vm8, %v230_v43, 0.0  ;;  %340 = vmatprep.subr.mxu0 %v300_v45 }
  0xcc   : > { %341 = vmatpush1.msra.mxu0 %v299_v48  ;;  %v278_v51 = vrot.slane %v232_v46, 4  ;;  %v279_v52 = vrot.slane %v233_v47, 4 }
  0xcd   : > { %v219_v49 = vpop.permute.xlu1 %218  ;;  %v217_v50 = vpop.permute.xlu0 %216 }
  0xce   : > { %v221_v53 = vsel %vm220_vm14, %v217_v50, %v219_v49  ;;  %v222_v54 = vsel %vm220_vm14, %v219_v49, %v217_v50 }
  0xcf   : > { %v223_v55 = vsel %vm188_vm15, %v222_v54, 0.0  ;;  %v224_v56 = vsel %vm878_vm1, %v221_v53, 0.0  ;;  %vm186_vm1 = vmand %vm176_vm13, %vm906_vm10 }
  0xd0   : > { %v298_v57 = vsel %vm294_vm5, %v224_v56, %v279_v52  ;;  %v297_v58 = vsel %vm294_vm5, %v223_v55, %v278_v51 }
  0xd1   : > { %v210_v59 = vpop.permute.xlu1 %209  ;;  %342 = vmatprep.subr.mxu0 %v298_v57  ;;  %v208_v60 = vpop.permute.xlu0 %207 }
  0xd2   : > { %v213_v61 = vsel %vm211_vm0, %v210_v59, %v208_v60  ;;  %343 = vmatpush1.msra.mxu0 %v297_v58  ;;  %v212_v62 = vsel %vm211_vm0, %v208_v60, %v210_v59 }
  0xd3   : > { %v214_v63 = vsel %vm176_vm13, %v213_v61, 0.0  ;;  %v273_v3 = vrot.slane %v212_v62, 4 }
  0xd4   : > { %v272_v2 = vrot.slane %v214_v63, 4 }
  0xd5   : > { %v201_v0 = vpop.permute.xlu1 %200  ;;  %v199_v1 = vpop.permute.xlu0 %198 }
  0xd6   : > { %v203_v5 = vsel %vm202_vm2, %v199_v1, %v201_v0  ;;  %v204_v6 = vsel %vm202_vm2, %v201_v0, %v199_v1 }
  0xd7   : > { %v205_v7 = vsel %vm186_vm1, %v204_v6, 0.0  ;;  %v206_v8 = vsel %vm896_vm8, %v203_v5, 0.0 }
  0xd8   : > { %v296_v9 = vsel %vm294_vm5, %v206_v8, %v273_v3  ;;  %v295_v10 = vsel %vm294_vm5, %v205_v7, %v272_v2 }
  0xd9   : > { %344 = vmatprep.subr.mxu0 %v296_v9 }
  0xda   : > { %345 = vmatpush1.msra.mxu0 %v295_v10 }
  0xdb   : > { %495 = vmatmul.mubr.msk.f32.vlgmr.msra.gmra.mxu0 %vm304_vm3, %v303_v11 }
 0x19b   : > { %v380_v4 = vpop.f32.mrf.mxu0 }
 0x19c   : > { %385 = vst [vmem:[%s172_s25] sm:$0xff] %v380_v4 }
 0x19d   : > { %v382_v12 = vpop.f32.mrf.mxu0 }
 0x19e   : > { %386 = vst [vmem:[%s172_s25 + $0x8] sm:$0xff] %v382_v12 }
 0x19f   : > { %637 = shalt.err (!%p634_p3)
}
 0x1a0   : > { %s638_s7 = scalar_lea.hbm %s400_s4, 256  ;;  %s642_s14 = scalar_lea.hbm %s992_s2, 512 }
 0x1a1   : > { %p639_p12 = scmp.ne.s32.totalorder %s400_s4, %s638_s7  ;;  %p643_p6 = scmp.lt.s32.totalorder %s400_s4, %s992_s2 }
 0x1a2   : > { %p644_p4 = scmp.lt.s32.totalorder %s642_s14, %s638_s7 }
 0x1a3   : > { %p640_p5 = pnand %p639_p12, %p1017_p11 }
 0x1a4   : > { %p645_p8 = por %p644_p4, %p643_p6 }
 0x1a5   : > { %p641_p7 = pneg %p640_p5 }
 0x1a7   : > { %p646_p9 = pnand %p645_p8, %p641_p7 }
 0x1a9   : > { %649 = shalt.err (!%p646_p9)
}
 0x1aa   : > { %509 = dma.vmem_to_hbm [thread:$0]  (%p1017_p11), %s950_s26, 256, %s400_s4, %s388_s6  }
 0x1ab PF: > { %s414_s22 = sand.u32 1, %s680_s9   ;;  %p1018_p13 = scmp.ne.s32.totalorder %s998_s16, 0 }
 0x1ac   : > { %p1019_p10 = scmp.ge.s32.totalorder %s692_s12, 2  ;;  %s415_s23 = scalar_lea.sflag [#allocation4], %s414_s22 }
 0x1ae   : > { %p520_p1 = pnand %p1019_p10, %p1018_p13 }
 0x1b0   : > { %p521_p2 = pneg %p520_p1 }
 0x1b2   : > { %675 = dma.done.wait (%p521_p2), %s415_s23, 256  }
 0x1b3   : > { %677 = vsyncadd (%p521_p2), %s415_s23, 4294967040  ;;  %p16_p0 = scmp.ge.s32.totalorder %s769_s20, 4   ;;  %s1020_s9 = smov %s684_s10 }
 0x1b4   : > { %s1021_s10 = smov %s688_s11  ;;  %s1022_s11 = smov %s796_s28 }
 0x1b5   : > { %s1023_s12 = smov %s769_s20  ;;  %18 = sbr.rel (!%p16_p0) target bundleno = 6 (0x6), region = 77 }
 0x1ba   :  { %420 = vsyncpa [#allocation3], 1 }
 0x1bb   :  { %422 = vsyncpa [#allocation3 + $0x1], 1 }
 0x1bc   :  { %423 = vsyncpa [#allocation6], 1 }
 0x1bd   :  { %424 = vsyncpa [#allocation4], 1 }
 0x1be   :  { %426 = vsyncpa [#allocation4 + $0x1], 1 }

</bundles_post_ra>
